<compile_context>
chip_gen: v6e
topology: v6e:2x2x1
jax: 0.10.0
libtpu: 0.0.40
codegen_flags: <defaults>
</compile_context>

<pallas_src>
import functools

import jax
import jax.numpy as jnp
from jax import lax
from jax.experimental import pallas as pl
from jax.experimental.pallas import tpu as pltpu  # noqa: F401  (TPU backend)


def _conv_linear_kernel(x_ref, w_ref, b_ref, o_ref, *, mxu_dtype):
    # x_ref: (B, in)   w_ref: (out, in)   b_ref: (1, out)   o_ref: (B, out)
    x = x_ref[...].astype(mxu_dtype)
    w = w_ref[...].astype(mxu_dtype)
    # Contract x dim 1 with w dim 1 -> (B, out); no weight transpose materializes.
    acc = lax.dot_general(
        x, w,
        dimension_numbers=(((1,), (1,)), ((), ())),
        preferred_element_type=jnp.float32,
    )
    # Epilogue (bias add + cast) stays in f32 on the VPU.
    o_ref[...] = (acc + b_ref[...]).astype(o_ref.dtype)


def conv_linear_forward(x, weight, bias, max_batch_size, *, mxu_dtype=jnp.bfloat16):
    """Pallas implementation of ConvLinear.forward.

    x:      (B, in_features)            float32
    weight: (out_features, in_features) float32  (the shared per-group conv kernel,
                                                  squeezed over the size-1 spatial dim)
    bias:   (out_features,)             float32
    returns (B, out_features)
    """
    batch_size, in_features = x.shape
    out_features = weight.shape[0]
    assert batch_size <= max_batch_size, "batch larger than max_batch_size"

    b2d = bias.reshape(1, out_features)

    flops = 2 * batch_size * in_features * out_features
    bytes_accessed = (
        x.size * x.dtype.itemsize
        + weight.size * weight.dtype.itemsize
        + bias.size * bias.dtype.itemsize
        + batch_size * out_features * x.dtype.itemsize
    )

    kernel = functools.partial(_conv_linear_kernel, mxu_dtype=mxu_dtype)

    return pl.pallas_call(
        kernel,
        out_shape=jax.ShapeDtypeStruct((batch_size, out_features), x.dtype),
        # No grid: one invocation, full-array VMEM blocks (satisfies the (8,128)
        # rule because block_shape == full array shape).
        in_specs=[
            pl.BlockSpec((batch_size, in_features), lambda: (0, 0)),
            pl.BlockSpec((out_features, in_features), lambda: (0, 0)),
            pl.BlockSpec((1, out_features), lambda: (0, 0)),
        ],
        out_specs=pl.BlockSpec((batch_size, out_features), lambda: (0, 0)),
        cost_estimate=pl.CostEstimate(
            flops=flops, transcendentals=0, bytes_accessed=bytes_accessed
        ),
    )(x, weight, b2d)


if __name__ == "__main__":
    # Module config: ConvLinear(in_features=32, out_features=64, max_batch_size=4)
    in_features = 32
    out_features = 64
    max_batch_size = 4
    batch = 2

    key = jax.random.PRNGKey(0)
    kx, kw, kb = jax.random.split(key, 3)

    x = jax.random.normal(kx, (batch, in_features), dtype=jnp.float32)
    # Conv1d weight (out, in, 1) squeezed to (out, in); shared across the expanded batch dim.
    weight = jax.random.normal(kw, (out_features, in_features), dtype=jnp.float32) * 0.1
    bias = jax.random.normal(kb, (out_features,), dtype=jnp.float32) * 0.1

    # Reference: the module is mathematically y = x @ W^T + b.
    y_ref = x @ weight.T + bias[None, :]

    # Exact f32 MXU-operand path (tight tolerance).
    y_f32 = jax.block_until_ready(
        conv_linear_forward(x, weight, bias, max_batch_size, mxu_dtype=jnp.float32)
    )
    assert y_f32.shape == (batch, out_features)
    assert jnp.allclose(y_f32, y_ref, atol=1e-5, rtol=1e-5)

    # Default fast path: bf16 MXU operands, f32 accumulate (looser tolerance).
    y_bf16 = jax.block_until_ready(
        conv_linear_forward(x, weight, bias, max_batch_size)
    )
    assert y_bf16.shape == (batch, out_features)
    assert jnp.allclose(y_bf16, y_ref, atol=3e-2, rtol=3e-2)

    print("KERNEL_OK")
</pallas_src>

<mosaic_0001>
module attributes {stable_mosaic.version = 11 : i64} {
  func.func @_conv_linear_kernel(%arg0: memref<2x32xf32, #tpu.memory_space<vmem>>, %arg1: memref<64x32xf32, #tpu.memory_space<vmem>>, %arg2: memref<1x64xf32, #tpu.memory_space<vmem>>, %arg3: memref<2x64xf32, #tpu.memory_space<vmem>>) attributes {dimension_semantics = [], scalar_prefetch = 0 : i64, scratch_operands = 0 : i64, tpu.core_type = #tpu.core_type<tc>} {
    %c0 = arith.constant 0 : index
    %c0_0 = arith.constant 0 : index
    %0 = vector.load %arg0[%c0, %c0_0] : memref<2x32xf32, #tpu.memory_space<vmem>>, vector<2x32xf32>
    %c0_1 = arith.constant 0 : index
    %c0_2 = arith.constant 0 : index
    %1 = vector.load %arg1[%c0_1, %c0_2] : memref<64x32xf32, #tpu.memory_space<vmem>>, vector<64x32xf32>
    %cst = arith.constant dense<0.000000e+00> : vector<2x64xf32>
    %2 = tpu.matmul %0, %1, %cst {dimension_numbers = #tpu.dot_dimension_numbers<[1], [1], [0], [0], [0, 0, 1, 0], [], []>} : vector<2x32xf32>, vector<64x32xf32>, vector<2x64xf32> -> vector<2x64xf32>
    %c0_3 = arith.constant 0 : index
    %c0_4 = arith.constant 0 : index
    %3 = vector.load %arg2[%c0_3, %c0_4] : memref<1x64xf32, #tpu.memory_space<vmem>>, vector<1x64xf32>
    %4 = vector.broadcast %3 : vector<1x64xf32> to vector<2x64xf32>
    %5 = arith.addf %2, %4 : vector<2x64xf32>
    %c0_5 = arith.constant 0 : index
    %c0_6 = arith.constant 0 : index
    %6 = vector.load %arg3[%c0_5, %c0_6] : memref<2x64xf32, #tpu.memory_space<vmem>>, vector<2x64xf32>
    tpu.vector_store %arg3[%c0_5, %c0_6], %5 {strides = array<i32>} : memref<2x64xf32, #tpu.memory_space<vmem>>, vector<2x64xf32>,
    return
  }
}

</mosaic_0001>

<bundles_post_ra>
// kernel: tpu_custom_call.1
= control target key start
LH: loop header
LB: loop body
LE: loop exit
PB: predicated region body
PF: predicated region fallthrough
CT: control target
= control target key end

     0   :  { %vm31_vm0 = vcmask 261120   ;;  %v208_v1 = vmov 0.0   ;;  %vm209_vm1 = vmmov 0   ;;  %s273_s0 = inlined_call_operand.vmem [shape: f32[2,32], index: 0, kind: input, shape index: {}]   ;;  %s274_s1 = inlined_call_operand.vmem [shape: f32[64,32], index: 1, kind: input, shape index: {}]   ;;  %s275_s2 = inlined_call_operand.vmem [shape: f32[1,64], index: 2, kind: input, shape index: {}]   ;;  %s276_s3 = inlined_call_operand.hbm [shape: f32[2,64], index: 3, kind: output, shape index: {}]  }
   0x1   :  { %v23_v0 = vld [vmem:[%s274_s1 + $0x38] sm:$0xff]  ;;  %164 = vmatprep.subr.mxu0 %v208_v1  ;;  %180 = vmatprep.mubr.msk.f32.mxu0 %vm209_vm1, %v208_v1  ;;  %v22_v2 = vld [vmem:[%s274_s1 + $0x30] sm:$0xff] }
   0x2   :  { %165 = vmatpush3.xpose.msk.msra.mxu0 %vm31_vm0, %v23_v0 }
   0x3   :  { %166 = vmatprep.subr.mxu0 %v208_v1 }
   0x4   :  { %8 = vsyncpa [#allocation3], 0  ;;  %v21_v3 = vld [vmem:[%s274_s1 + $0x28] sm:$0xff]  ;;  %v20_v4 = vld [vmem:[%s274_s1 + $0x20] sm:$0xff]  ;;  %s210_s5 = smov [#allocation2]   ;;  %vm129_vm2 = vcmask 517120  }
   0x5   :  { %v19_v5 = vld [vmem:[%s274_s1 + $0x18] sm:$0xff]  ;;  %v18_v6 = vld [vmem:[%s274_s1 + $0x10] sm:$0xff]  ;;  %v17_v7 = vld [vmem:[%s274_s1 + $0x8] sm:$0xff]  ;;  %s137_s6 = sshll.u32 %s210_s5, 4  ;;  %s138_s6 = int_to_ptr.vmem [resolvable:$true] %s137_s6 }
   0x6   :  { %167 = vmatpush3.xpose.msk.msra.mxu0 %vm31_vm0, %v22_v2  ;;  %v16_v8 = vld [vmem:[%s274_s1] sm:$0xff]  ;;  %s186_s1 = scalar_lea.vmem %s138_s6, 32  ;;  %p191_p1 = scmp.lt.s32.totalorder %s138_s6, %s138_s6 }
   0x7   :  { %168 = vmatprep.subr.mxu0 %v208_v1  ;;  %v15_v9 = vld [vmem:[%s273_s0] sm:$0x3]  ;;  %p187_p0 = scmp.ne.s32.totalorder %s138_s6, %s186_s1  ;;  %p192_p2 = scmp.lt.s32.totalorder %s186_s1, %s186_s1 }
   0x8   :  { %v145_v10 = vld [vmem:[%s275_s2] ss:$0 sm:$0xff] }
   0x9   :  { %p193_p3 = por %p192_p2, %p191_p1 }
   0xa   :  { %169 = vmatpush3.xpose.msk.msra.mxu0 %vm31_vm0, %v21_v3 }
   0xb   :  { %170 = vmatprep.subr.mxu0 %v208_v1  ;;  %p194_p4 = pnand %p193_p3, %p187_p0 }
   0xe   :  { %171 = vmatpush3.xpose.msk.msra.mxu0 %vm31_vm0, %v20_v4 }
   0xf   :  { %172 = vmatprep.subr.mxu0 %v208_v1 }
  0x12   :  { %173 = vmatpush3.xpose.msk.msra.mxu0 %vm31_vm0, %v19_v5 }
  0x13   :  { %174 = vmatprep.subr.mxu0 %v208_v1 }
  0x16   :  { %175 = vmatpush3.xpose.msk.msra.mxu0 %vm31_vm0, %v18_v6 }
  0x17   :  { %176 = vmatprep.subr.mxu0 %v208_v1 }
  0x1a   :  { %177 = vmatpush3.xpose.msk.msra.mxu0 %vm31_vm0, %v17_v7 }
  0x1b   :  { %178 = vmatprep.subr.mxu0 %v208_v1 }
  0x1e   :  { %179 = vmatpush3.xpose.msk.msra.mxu0 %vm31_vm0, %v16_v8 }
  0x21   :  { %181 = vmatmul.mubr.msk.f32.vlgmr.msra.gmra.mxu0 %vm31_vm0, %v15_v9 }
  0xe1   :  { %v125_v11 = vpop.f32.mrf.mxu0 }
  0xe2   :  { %v126_v12 = vadd.f32 %v145_v10, %v125_v11 }
  0xe3   :  { %v182_v13 = vpop.f32.mrf.mxu0 }
  0xe4   :  { %130 = vst.msk [vmem:[#allocation2] sm:$0x3] %vm129_vm2, %v126_v12 }
  0xe5   :  { %197 = shalt.err (!%p194_p4)
}
  0xe6   :  { %140 = dma.vmem_to_hbm [thread:$0]  %s138_s6, 32, %s276_s3, [#allocation3]  }
  0xe7   :  { %206 = dma.done.wait [#allocation3], 32  }
  0xe8   :  { %207 = vsyncadd [#allocation3], 4294967264 }
  0xe9   :  { %144 = vsyncpa [#allocation3], 1 }

</bundles_post_ra>
